<compile_context>
chip_gen: v6e
topology: v6e:2x2x1
jax: 0.10.0
libtpu: 0.0.40
codegen_flags: <defaults>
</compile_context>

<pallas_src>
import functools

import jax
import jax.numpy as jnp
from jax.experimental import pallas as pl
from jax.experimental.pallas import tpu as pltpu

LANE = 128        # lane width; lane-dense output path pads action dim to this
MIN_TILE = 16     # bf16 packs 16 rows per vreg -> batch tiles are multiples of 16
TWO_CORE_MIN_B = 256  # split into >=2 grid steps above this so v7x's 2 TCs both work


def _round_up(x, m):
    return (x + m - 1) // m * m


def _cdiv(a, b):
    return -(-a // b)


def _choose_tiling(B, batch_tile):
    """Even batch tiling: bounded padding, >=2 parallel steps for large B (v7x)."""
    batch_tile = max(_round_up(batch_tile, MIN_TILE), MIN_TILE)
    n_tiles = _cdiv(B, batch_tile)
    # v7x has 2 TensorCores; the "parallel" grid axis is how work is sharded
    # across them.  Keep at least 2 steps for large batches (harmless on
    # 1-TC v5e/v6e: just two smaller sequential steps).
    if n_tiles == 1 and B >= TWO_CORE_MIN_B:
        n_tiles = 2
    tile = _round_up(_cdiv(B, n_tiles), MIN_TILE)
    B_pad = n_tiles * tile
    return tile, B_pad, n_tiles


def qfunction_kernel(x_ref,
                     w1_ref, b1_ref,
                     w2_ref, b2_ref,
                     w3_ref, b3_ref,
                     w4_ref, b4_ref,
                     out_ref):
    """Whole 4-layer MLP for one bf16 batch tile; bf16 weights resident in VMEM.

    MXU matmuls with f32 accumulation; bias adds / ReLU / casts run on the VPU
    as filler under MXU/DMA slack (kept in-kernel on purpose — do not hoist).
    """
    x = x_ref[...]  # already bf16, streamed straight from HBM

    # Layer 1: Linear + ReLU
    h = jnp.dot(x, w1_ref[...], preferred_element_type=jnp.float32) + b1_ref[...]
    h = jnp.maximum(h, 0.0).astype(jnp.bfloat16)

    # Layer 2: Linear + ReLU
    h = jnp.dot(h, w2_ref[...], preferred_element_type=jnp.float32) + b2_ref[...]
    h = jnp.maximum(h, 0.0).astype(jnp.bfloat16)

    # Layer 3: Linear + ReLU
    h = jnp.dot(h, w3_ref[...], preferred_element_type=jnp.float32) + b3_ref[...]
    h = jnp.maximum(h, 0.0).astype(jnp.bfloat16)

    # Layer 4: Linear (no activation — Q-values)
    q = jnp.dot(h, w4_ref[...], preferred_element_type=jnp.float32) + b4_ref[...]

    out_ref[...] = q.astype(out_ref.dtype)  # bf16 writeback (halved HBM traffic)


@functools.partial(jax.jit, static_argnames=("batch_tile",))
def qfunction_forward(states, params, *, batch_tile=1024):
    """states: (B, state_dim) float32. params: dict of (in,out) weights + (1,out) biases.

    Returns (B, action_n) float32 Q-values.
    """
    B, state_dim = states.shape
    H = params["w1"].shape[1]
    action_n = params["w4"].shape[1]

    # ---- static tiling choices (shapes are static under jit) -----------------
    tile, B_pad, n_tiles = _choose_tiling(B, batch_tile)

    # Output width policy:
    #  * multi-tile batches: write only the real action columns (block last dim
    #    equals the full array dim -> legal); writeback scales with B so the
    #    narrow path wins decisively for large batches.
    #  * single small tile: keep the 128-lane-dense slab (full-width vst,
    #    fixed tiny cost).
    if n_tiles > 1:
        out_n = action_n
    else:
        out_n = _round_up(max(action_n, LANE), LANE)

    # ---- prepare operands (cheap XLA ops, fused under jit) -------------------
    x = states.astype(jnp.bfloat16)            # halve streamed input bytes
    if B_pad != B:
        x = jnp.pad(x, ((0, B_pad - B), (0, 0)))

    w1 = params["w1"].astype(jnp.bfloat16)
    w2 = params["w2"].astype(jnp.bfloat16)
    w3 = params["w3"].astype(jnp.bfloat16)
    w4 = params["w4"].astype(jnp.bfloat16)
    b1 = params["b1"].astype(jnp.float32)
    b2 = params["b2"].astype(jnp.float32)
    b3 = params["b3"].astype(jnp.float32)
    b4 = params["b4"].astype(jnp.float32)
    if out_n != action_n:
        w4 = jnp.pad(w4, ((0, 0), (0, out_n - action_n)))
        b4 = jnp.pad(b4, ((0, 0), (0, out_n - action_n)))

    # Weights/biases are constant across the grid: resident single-buffered blocks.
    resident = lambda shape: pl.BlockSpec(
        shape, lambda i: (0, 0), pipeline_mode=pl.Buffered(1))

    grid_spec = pltpu.PrefetchScalarGridSpec(
        num_scalar_prefetch=0,
        grid=(n_tiles,),
        in_specs=[
            pl.BlockSpec((tile, state_dim), lambda i: (i, 0)),   # streamed bf16 states
            resident((state_dim, H)), resident((1, H)),          # layer 1
            resident((H, H)), resident((1, H)),                  # layer 2
            resident((H, H)), resident((1, H)),                  # layer 3
            resident((H, out_n)), resident((1, out_n)),          # layer 4
        ],
        out_specs=pl.BlockSpec((tile, out_n), lambda i: (i, 0)),
    )

    q_padded = pl.pallas_call(
        qfunction_kernel,
        out_shape=jax.ShapeDtypeStruct((B_pad, out_n), jnp.bfloat16),
        grid_spec=grid_spec,
        compiler_params=pltpu.CompilerParams(
            dimension_semantics=("parallel",)),
    )(x, w1, b1, w2, b2, w3, b3, w4, b4)

    # Slice off batch/action padding and hand back f32 Q-values.
    return q_padded[:B, :action_n].astype(jnp.float32)


def init_qfunction_params(key, state_dim, action_n, inner_layer):
    """Deterministic init mimicking nn.Linear's U(-1/sqrt(fan_in), 1/sqrt(fan_in)).

    Weights stored as (in_features, out_features); biases as (1, out_features).
    """
    dims = [(state_dim, inner_layer),
            (inner_layer, inner_layer),
            (inner_layer, inner_layer),
            (inner_layer, action_n)]
    params = {}
    for idx, (fan_in, fan_out) in enumerate(dims, start=1):
        key, kw, kb = jax.random.split(key, 3)
        bound = 1.0 / jnp.sqrt(jnp.float32(fan_in))
        params[f"w{idx}"] = jax.random.uniform(
            kw, (fan_in, fan_out), jnp.float32, minval=-bound, maxval=bound)
        params[f"b{idx}"] = jax.random.uniform(
            kb, (1, fan_out), jnp.float32, minval=-bound, maxval=bound)
    return params


def qfunction_reference(states, params):
    """Pure-JAX reference using the same bf16-operand / f32-accumulate recipe."""
    def dense(x, w, b):
        return jnp.dot(x.astype(jnp.bfloat16), w.astype(jnp.bfloat16),
                       preferred_element_type=jnp.float32) + b.astype(jnp.float32)
    h = jnp.maximum(dense(states, params["w1"], params["b1"]), 0.0)
    h = jnp.maximum(dense(h, params["w2"], params["b2"]), 0.0)
    h = jnp.maximum(dense(h, params["w3"], params["b3"]), 0.0)
    return dense(h, params["w4"], params["b4"])


if __name__ == "__main__":
    # Small, module-consistent shapes: 128 hidden, 4 actions, 32-dim states.
    STATE_DIM, INNER, ACTION_N = 32, 128, 4

    key = jax.random.PRNGKey(0)
    key_params, key_small, key_big = jax.random.split(key, 3)
    params = init_qfunction_params(key_params, STATE_DIM, ACTION_N, INNER)

    # Case 1: small batch -> single 16-row tile, 128-lane-dense bf16 output path.
    states_small = jax.random.normal(key_small, (8, STATE_DIM), jnp.float32)
    q_small = jax.block_until_ready(qfunction_forward(states_small, params))
    ref_small = qfunction_reference(states_small, params)
    assert q_small.shape == (8, ACTION_N)
    assert jnp.allclose(q_small, ref_small, atol=2e-2, rtol=2e-2), "mismatch (small batch)"

    # Case 2: awkward batch (300) -> split into 2 even 160-row tiles (grid=2),
    # narrow action_n-wide bf16 output path, <=20 padded rows total.
    states_big = jax.random.normal(key_big, (300, STATE_DIM), jnp.float32)
    q_big = jax.block_until_ready(qfunction_forward(states_big, params))
    ref_big = qfunction_reference(states_big, params)
    assert q_big.shape == (300, ACTION_N)
    assert jnp.allclose(q_big, ref_big, atol=2e-2, rtol=2e-2), "mismatch (padded batch)"

    print("KERNEL_OK")
</pallas_src>

<mosaic_0001>
module attributes {stable_mosaic.version = 11 : i64} {
  func.func @qfunction_kernel(%arg0: i32, %arg1: memref<16x32xbf16, #tpu.memory_space<vmem>>, %arg2: memref<32x128xbf16, #tpu.memory_space<vmem>>, %arg3: memref<1x128xf32, #tpu.memory_space<vmem>>, %arg4: memref<128x128xbf16, #tpu.memory_space<vmem>>, %arg5: memref<1x128xf32, #tpu.memory_space<vmem>>, %arg6: memref<128x128xbf16, #tpu.memory_space<vmem>>, %arg7: memref<1x128xf32, #tpu.memory_space<vmem>>, %arg8: memref<128x128xbf16, #tpu.memory_space<vmem>>, %arg9: memref<1x128xf32, #tpu.memory_space<vmem>>, %arg10: memref<16x128xbf16, #tpu.memory_space<vmem>>) attributes {dimension_semantics = [#tpu.dimension_semantics<parallel>], iteration_bounds = array<i64: 1>, scalar_prefetch = 0 : i64, scratch_operands = 0 : i64, tpu.core_type = #tpu.core_type<tc>, window_params = [{transform_indices = @transform_0, window_bounds = array<i64: 16, 32>}, {pipeline_mode = #tpu.pipeline_mode<synchronous>, transform_indices = @transform_1, window_bounds = array<i64: 32, 128>}, {pipeline_mode = #tpu.pipeline_mode<synchronous>, transform_indices = @transform_2, window_bounds = array<i64: 1, 128>}, {pipeline_mode = #tpu.pipeline_mode<synchronous>, transform_indices = @transform_3, window_bounds = array<i64: 128, 128>}, {pipeline_mode = #tpu.pipeline_mode<synchronous>, transform_indices = @transform_4, window_bounds = array<i64: 1, 128>}, {pipeline_mode = #tpu.pipeline_mode<synchronous>, transform_indices = @transform_5, window_bounds = array<i64: 128, 128>}, {pipeline_mode = #tpu.pipeline_mode<synchronous>, transform_indices = @transform_6, window_bounds = array<i64: 1, 128>}, {pipeline_mode = #tpu.pipeline_mode<synchronous>, transform_indices = @transform_7, window_bounds = array<i64: 128, 128>}, {pipeline_mode = #tpu.pipeline_mode<synchronous>, transform_indices = @transform_8, window_bounds = array<i64: 1, 128>}, {transform_indices = @transform_9, window_bounds = array<i64: 16, 128>}]} {
    %c0 = arith.constant 0 : index
    %c0_0 = arith.constant 0 : index
    %0 = vector.load %arg1[%c0, %c0_0] : memref<16x32xbf16, #tpu.memory_space<vmem>>, vector<16x32xbf16>
    %c0_1 = arith.constant 0 : index
    %c0_2 = arith.constant 0 : index
    %1 = vector.load %arg2[%c0_1, %c0_2] : memref<32x128xbf16, #tpu.memory_space<vmem>>, vector<32x128xbf16>
    %cst = arith.constant dense<0.000000e+00> : vector<16x128xf32>
    %2 = tpu.matmul %0, %1, %cst {dimension_numbers = #tpu.dot_dimension_numbers<[1], [0], [0], [1], [0, 0, 1, 1], [], []>} : vector<16x32xbf16>, vector<32x128xbf16>, vector<16x128xf32> -> vector<16x128xf32>
    %c0_3 = arith.constant 0 : index
    %c0_4 = arith.constant 0 : index
    %3 = vector.load %arg3[%c0_3, %c0_4] : memref<1x128xf32, #tpu.memory_space<vmem>>, vector<1x128xf32>
    %4 = vector.broadcast %3 : vector<1x128xf32> to vector<16x128xf32>
    %5 = arith.addf %2, %4 : vector<16x128xf32>
    %cst_5 = arith.constant 0.000000e+00 : f32
    %6 = vector.broadcast %cst_5 : f32 to vector<16x128xf32>
    %7 = arith.maximumf %5, %6 : vector<16x128xf32>
    %8 = arith.truncf %7 : vector<16x128xf32> to vector<16x128xbf16>
    %c0_6 = arith.constant 0 : index
    %c0_7 = arith.constant 0 : index
    %9 = vector.load %arg4[%c0_6, %c0_7] : memref<128x128xbf16, #tpu.memory_space<vmem>>, vector<128x128xbf16>
    %cst_8 = arith.constant dense<0.000000e+00> : vector<16x128xf32>
    %10 = tpu.matmul %8, %9, %cst_8 {dimension_numbers = #tpu.dot_dimension_numbers<[1], [0], [0], [1], [0, 0, 1, 1], [], []>} : vector<16x128xbf16>, vector<128x128xbf16>, vector<16x128xf32> -> vector<16x128xf32>
    %c0_9 = arith.constant 0 : index
    %c0_10 = arith.constant 0 : index
    %11 = vector.load %arg5[%c0_9, %c0_10] : memref<1x128xf32, #tpu.memory_space<vmem>>, vector<1x128xf32>
    %12 = vector.broadcast %11 : vector<1x128xf32> to vector<16x128xf32>
    %13 = arith.addf %10, %12 : vector<16x128xf32>
    %cst_11 = arith.constant 0.000000e+00 : f32
    %14 = vector.broadcast %cst_11 : f32 to vector<16x128xf32>
    %15 = arith.maximumf %13, %14 : vector<16x128xf32>
    %16 = arith.truncf %15 : vector<16x128xf32> to vector<16x128xbf16>
    %c0_12 = arith.constant 0 : index
    %c0_13 = arith.constant 0 : index
    %17 = vector.load %arg6[%c0_12, %c0_13] : memref<128x128xbf16, #tpu.memory_space<vmem>>, vector<128x128xbf16>
    %cst_14 = arith.constant dense<0.000000e+00> : vector<16x128xf32>
    %18 = tpu.matmul %16, %17, %cst_14 {dimension_numbers = #tpu.dot_dimension_numbers<[1], [0], [0], [1], [0, 0, 1, 1], [], []>} : vector<16x128xbf16>, vector<128x128xbf16>, vector<16x128xf32> -> vector<16x128xf32>
    %c0_15 = arith.constant 0 : index
    %c0_16 = arith.constant 0 : index
    %19 = vector.load %arg7[%c0_15, %c0_16] : memref<1x128xf32, #tpu.memory_space<vmem>>, vector<1x128xf32>
    %20 = vector.broadcast %19 : vector<1x128xf32> to vector<16x128xf32>
    %21 = arith.addf %18, %20 : vector<16x128xf32>
    %cst_17 = arith.constant 0.000000e+00 : f32
    %22 = vector.broadcast %cst_17 : f32 to vector<16x128xf32>
    %23 = arith.maximumf %21, %22 : vector<16x128xf32>
    %24 = arith.truncf %23 : vector<16x128xf32> to vector<16x128xbf16>
    %c0_18 = arith.constant 0 : index
    %c0_19 = arith.constant 0 : index
    %25 = vector.load %arg8[%c0_18, %c0_19] : memref<128x128xbf16, #tpu.memory_space<vmem>>, vector<128x128xbf16>
    %cst_20 = arith.constant dense<0.000000e+00> : vector<16x128xf32>
    %26 = tpu.matmul %24, %25, %cst_20 {dimension_numbers = #tpu.dot_dimension_numbers<[1], [0], [0], [1], [0, 0, 1, 1], [], []>} : vector<16x128xbf16>, vector<128x128xbf16>, vector<16x128xf32> -> vector<16x128xf32>
    %c0_21 = arith.constant 0 : index
    %c0_22 = arith.constant 0 : index
    %27 = vector.load %arg9[%c0_21, %c0_22] : memref<1x128xf32, #tpu.memory_space<vmem>>, vector<1x128xf32>
    %28 = vector.broadcast %27 : vector<1x128xf32> to vector<16x128xf32>
    %29 = arith.addf %26, %28 : vector<16x128xf32>
    %30 = arith.truncf %29 : vector<16x128xf32> to vector<16x128xbf16>
    %c0_23 = arith.constant 0 : index
    %c0_24 = arith.constant 0 : index
    %31 = vector.load %arg10[%c0_23, %c0_24] : memref<16x128xbf16, #tpu.memory_space<vmem>>, vector<16x128xbf16>
    tpu.vector_store %arg10[%c0_23, %c0_24], %30 {strides = array<i32>} : memref<16x128xbf16, #tpu.memory_space<vmem>>, vector<16x128xbf16>,
    return
  }
  func.func @transform_0(%arg0: i32) -> (i32, i32) {
    %c0_i32 = arith.constant 0 : i32
    %c0_i32_0 = arith.constant 0 : i32
    return %arg0, %c0_i32 : i32, i32
  }
  func.func @transform_1(%arg0: i32) -> (i32, i32) {
    %c0_i32 = arith.constant 0 : i32
    %c0_i32_0 = arith.constant 0 : i32
    %c0_i32_1 = arith.constant 0 : i32
    return %c0_i32, %c0_i32_0 : i32, i32
  }
  func.func @transform_2(%arg0: i32) -> (i32, i32) {
    %c0_i32 = arith.constant 0 : i32
    %c0_i32_0 = arith.constant 0 : i32
    %c0_i32_1 = arith.constant 0 : i32
    return %c0_i32, %c0_i32_0 : i32, i32
  }
  func.func @transform_3(%arg0: i32) -> (i32, i32) {
    %c0_i32 = arith.constant 0 : i32
    %c0_i32_0 = arith.constant 0 : i32
    %c0_i32_1 = arith.constant 0 : i32
    return %c0_i32, %c0_i32_0 : i32, i32
  }
  func.func @transform_4(%arg0: i32) -> (i32, i32) {
    %c0_i32 = arith.constant 0 : i32
    %c0_i32_0 = arith.constant 0 : i32
    %c0_i32_1 = arith.constant 0 : i32
    return %c0_i32, %c0_i32_0 : i32, i32
  }
  func.func @transform_5(%arg0: i32) -> (i32, i32) {
    %c0_i32 = arith.constant 0 : i32
    %c0_i32_0 = arith.constant 0 : i32
    %c0_i32_1 = arith.constant 0 : i32
    return %c0_i32, %c0_i32_0 : i32, i32
  }
  func.func @transform_6(%arg0: i32) -> (i32, i32) {
    %c0_i32 = arith.constant 0 : i32
    %c0_i32_0 = arith.constant 0 : i32
    %c0_i32_1 = arith.constant 0 : i32
    return %c0_i32, %c0_i32_0 : i32, i32
  }
  func.func @transform_7(%arg0: i32) -> (i32, i32) {
    %c0_i32 = arith.constant 0 : i32
    %c0_i32_0 = arith.constant 0 : i32
    %c0_i32_1 = arith.constant 0 : i32
    return %c0_i32, %c0_i32_0 : i32, i32
  }
  func.func @transform_8(%arg0: i32) -> (i32, i32) {
    %c0_i32 = arith.constant 0 : i32
    %c0_i32_0 = arith.constant 0 : i32
    %c0_i32_1 = arith.constant 0 : i32
    return %c0_i32, %c0_i32_0 : i32, i32
  }
  func.func @transform_9(%arg0: i32) -> (i32, i32) {
    %c0_i32 = arith.constant 0 : i32
    %c0_i32_0 = arith.constant 0 : i32
    return %arg0, %c0_i32 : i32, i32
  }
}

</mosaic_0001>

<bundles_post_ra>
// kernel: qfunction_forward.1
= control target key start
LH: loop header
LB: loop body
LE: loop exit
PB: predicated region body
PF: predicated region fallthrough
CT: control target
= control target key end

     0   :  { %v635_v0 = vmov 0.0   ;;  %vm636_vm0 = vmmov 0   ;;  %vm63_vm1 = vcmask 261120   ;;  %s817_s1 = inlined_call_operand.vmem [shape: bf16[32,128], index: 1, kind: input, shape index: {}]   ;;  %s818_s3 = inlined_call_operand.vmem [shape: bf16[128,128], index: 3, kind: input, shape index: {}]   ;;  %s819_s0 = inlined_call_operand.vmem [shape: bf16[16,32], index: 0, kind: input, shape index: {}]   ;;  %s820_s5 = inlined_call_operand.vmem [shape: bf16[128,128], index: 5, kind: input, shape index: {}]   ;;  %s821_s2 = inlined_call_operand.vmem [shape: f32[1,128], index: 2, kind: input, shape index: {}]   ;;  %s822_s7 = inlined_call_operand.vmem [shape: bf16[128,128], index: 7, kind: input, shape index: {}]   ;;  %s823_s4 = inlined_call_operand.vmem [shape: f32[1,128], index: 4, kind: input, shape index: {}]   ;;  %s824_s6 = inlined_call_operand.vmem [shape: f32[1,128], index: 6, kind: input, shape index: {}]   ;;  %s825_s8 = inlined_call_operand.vmem [shape: f32[1,128], index: 8, kind: input, shape index: {}]   ;;  %s826_s9 = inlined_call_operand.vmem [shape: bf16[16,128], index: 9, kind: output, shape index: {}]  }
   0x1   :  { %538 = vmatprep.subr.bf16.mxu0 %v635_v0  ;;  %v608_v1 = vld [vmem:[%s817_s1 + $0x8] sm:$0xff]   ;;  %542 = vmatprep.mubr.msk.bf16.mxu0 %vm636_vm0, %v635_v0  ;;  %v609_v2 = vld [vmem:[%s817_s1] sm:$0xff]   ;;  %v611_v3 = vld [vmem:[%s818_s3 + $0x38] sm:$0xff]  }
   0x2   :  { %546 = vmatprep.subr.bf16.mxu1 %v635_v0  ;;  %562 = vmatprep.mubr.msk.bf16.mxu1 %vm636_vm0, %v635_v0  ;;  %v610_v4 = vld [vmem:[%s819_s0] sm:$0xff]   ;;  %v612_v5 = vld [vmem:[%s818_s3 + $0x30] sm:$0xff]   ;;  %v613_v6 = vld [vmem:[%s818_s3 + $0x28] sm:$0xff]  }
   0x3   :  { %539 = vmatpush3.bf16.msra.mxu0 %v608_v1  ;;  %547 = vmatpush3.bf16.msra.mxu1 %v611_v3  ;;  %v614_v7 = vld [vmem:[%s818_s3 + $0x20] sm:$0xff]   ;;  %v615_v8 = vld [vmem:[%s818_s3 + $0x18] sm:$0xff]   ;;  %v616_v9 = vld [vmem:[%s818_s3 + $0x10] sm:$0xff]  }
   0x4   :  { %540 = vmatprep.subr.bf16.mxu0 %v635_v0  ;;  %548 = vmatprep.subr.bf16.mxu1 %v635_v0  ;;  %v617_v10 = vld [vmem:[%s818_s3 + $0x8] sm:$0xff]   ;;  %v618_v11 = vld [vmem:[%s818_s3] sm:$0xff]   ;;  %v619_v12 = vld [vmem:[%s820_s5 + $0x38] sm:$0xff]  }
   0x5   :  { %v620_v13 = vld [vmem:[%s820_s5 + $0x30] sm:$0xff]   ;;  %v621_v14 = vld [vmem:[%s820_s5 + $0x28] sm:$0xff]   ;;  %v622_v15 = vld [vmem:[%s820_s5 + $0x20] sm:$0xff]  }
   0x6   :  { %v623_v16 = vld [vmem:[%s820_s5 + $0x18] sm:$0xff]   ;;  %v467_v17 = vld [vmem:[%s821_s2] ss:$0 sm:$0xff]  ;;  %v624_v27 = vld [vmem:[%s820_s5 + $0x10] sm:$0xff]  }
   0x7   :  { %541 = vmatpush3.bf16.msra.mxu0 %v609_v2  ;;  %549 = vmatpush3.bf16.msra.mxu1 %v612_v5  ;;  %v625_v28 = vld [vmem:[%s820_s5 + $0x8] sm:$0xff]   ;;  %v626_v29 = vld [vmem:[%s820_s5] sm:$0xff]   ;;  %v627_v30 = vld [vmem:[%s822_s7 + $0x38] sm:$0xff]  }
   0x8   :  { %566 = vmatprep.subr.bf16.mxu0 %v635_v0  ;;  %550 = vmatprep.subr.bf16.mxu1 %v635_v0  ;;  %v628_v31 = vld [vmem:[%s822_s7 + $0x30] sm:$0xff]   ;;  %v629_v32 = vld [vmem:[%s822_s7 + $0x28] sm:$0xff]   ;;  %v630_v33 = vld [vmem:[%s822_s7 + $0x20] sm:$0xff]  }
   0x9   :  { %v631_v34 = vld [vmem:[%s822_s7 + $0x18] sm:$0xff]   ;;  %v472_v35 = vld [vmem:[%s823_s4] ss:$0 sm:$0xff]  ;;  %v632_v45 = vld [vmem:[%s822_s7 + $0x10] sm:$0xff]  }
   0xa   :  { %543 = vmatmul.mubr.msk.bf16.vlgmr.msra.gmra.mxu0 %vm63_vm1, %v610_v4  ;;  %v633_v46 = vld [vmem:[%s822_s7 + $0x8] sm:$0xff]   ;;  %v634_v47 = vld [vmem:[%s822_s7] sm:$0xff]  }
   0xb   :  { %582 = vmatprep.mubr.msk.bf16.mxu0 %vm636_vm0, %v635_v0  ;;  %551 = vmatpush3.bf16.msra.mxu1 %v613_v6  ;;  %v481_v48 = vld [vmem:[%s824_s6] ss:$0 sm:$0xff] }
   0xc   :  { %552 = vmatprep.subr.bf16.mxu1 %v635_v0  ;;  %567 = vmatpush3.bf16.msra.mxu0 %v619_v12  ;;  %v490_v59 = vld [vmem:[%s825_s8] ss:$0 sm:$0xff] }
   0xd   :  { %568 = vmatprep.subr.bf16.mxu0 %v635_v0 }
   0xf   :  { %553 = vmatpush3.bf16.msra.mxu1 %v614_v7 }
  0x10   :  { %554 = vmatprep.subr.bf16.mxu1 %v635_v0  ;;  %569 = vmatpush3.bf16.msra.mxu0 %v620_v13 }
  0x11   :  { %570 = vmatprep.subr.bf16.mxu0 %v635_v0 }
  0x13   :  { %555 = vmatpush3.bf16.msra.mxu1 %v615_v8 }
  0x14   :  { %556 = vmatprep.subr.bf16.mxu1 %v635_v0  ;;  %571 = vmatpush3.bf16.msra.mxu0 %v621_v14 }
  0x15   :  { %572 = vmatprep.subr.bf16.mxu0 %v635_v0 }
  0x17   :  { %557 = vmatpush3.bf16.msra.mxu1 %v616_v9 }
  0x18   :  { %558 = vmatprep.subr.bf16.mxu1 %v635_v0  ;;  %573 = vmatpush3.bf16.msra.mxu0 %v622_v15 }
  0x19   :  { %574 = vmatprep.subr.bf16.mxu0 %v635_v0 }
  0x1b   :  { %559 = vmatpush3.bf16.msra.mxu1 %v617_v10 }
  0x1c   :  { %560 = vmatprep.subr.bf16.mxu1 %v635_v0  ;;  %575 = vmatpush3.bf16.msra.mxu0 %v623_v16 }
  0x1d   :  { %576 = vmatprep.subr.bf16.mxu0 %v635_v0 }
  0x1f   :  { %561 = vmatpush3.bf16.msra.mxu1 %v618_v11 }
  0x20   :  { %586 = vmatprep.subr.bf16.mxu1 %v635_v0  ;;  %577 = vmatpush3.bf16.msra.mxu0 %v624_v27 }
  0x21   :  { %578 = vmatprep.subr.bf16.mxu0 %v635_v0 }
  0x24   :  { %579 = vmatpush3.bf16.msra.mxu0 %v625_v28 }
  0x25   :  { %580 = vmatprep.subr.bf16.mxu0 %v635_v0 }
  0x28   :  { %581 = vmatpush3.bf16.msra.mxu0 %v626_v29 }
  0xca   :  { %v101_v18 = vpop.f32.mrf.mxu0 }
  0xcb   :  { %v102_v20 = vadd.f32 %v467_v17, %v101_v18 }
  0xcc   :  { %v544_v19 = vpop.f32.mrf.mxu0 }
  0xcd   :  { %v108_v24 = vmax.f32 %v102_v20, 0.0 }
  0xce   :  { %v104_v21 = vpop.f32.mrf.mxu0 }
  0xcf   :  { %v105_v22 = vadd.f32 %v467_v17, %v104_v21 }
  0xd0   :  { %v545_v23 = vpop.f32.mrf.mxu0 }
  0xd1   :  { %v109_v25 = vmax.f32 %v105_v22, 0.0 }
  0xd3   :  { %v110_v26 = vpack.c.bf16 %v109_v25, %v108_v24 }
  0xd5   :  { %563 = vmatmul.mubr.bf16.vlgmr.msra.gmra.mxu1 %v110_v26 }
  0xd6   :  { %602 = vmatprep.mubr.msk.bf16.mxu1 %vm636_vm0, %v635_v0  ;;  %587 = vmatpush3.bf16.msra.mxu1 %v627_v30 }
  0xd7   :  { %588 = vmatprep.subr.bf16.mxu1 %v635_v0 }
  0xda   :  { %589 = vmatpush3.bf16.msra.mxu1 %v628_v31 }
  0xdb   :  { %590 = vmatprep.subr.bf16.mxu1 %v635_v0 }
  0xde   :  { %591 = vmatpush3.bf16.msra.mxu1 %v629_v32 }
  0xdf   :  { %592 = vmatprep.subr.bf16.mxu1 %v635_v0 }
  0xe2   :  { %593 = vmatpush3.bf16.msra.mxu1 %v630_v33 }
  0xe3   :  { %594 = vmatprep.subr.bf16.mxu1 %v635_v0 }
  0xe6   :  { %595 = vmatpush3.bf16.msra.mxu1 %v631_v34 }
  0xe7   :  { %596 = vmatprep.subr.bf16.mxu1 %v635_v0 }
  0xea   :  { %597 = vmatpush3.bf16.msra.mxu1 %v632_v45 }
  0xeb   :  { %598 = vmatprep.subr.bf16.mxu1 %v635_v0 }
  0xee   :  { %599 = vmatpush3.bf16.msra.mxu1 %v633_v46 }
  0xef   :  { %600 = vmatprep.subr.bf16.mxu1 %v635_v0 }
  0xf2   :  { %601 = vmatpush3.bf16.msra.mxu1 %v634_v47 }
 0x195   :  { %v216_v36 = vpop.f32.mrf.mxu1 }
 0x196   :  { %v217_v38 = vadd.f32 %v472_v35, %v216_v36 }
 0x197   :  { %v564_v37 = vpop.f32.mrf.mxu1 }
 0x198   :  { %v223_v42 = vmax.f32 %v217_v38, 0.0 }
 0x199   :  { %v219_v39 = vpop.f32.mrf.mxu1 }
 0x19a   :  { %v220_v40 = vadd.f32 %v472_v35, %v219_v39 }
 0x19b   :  { %v565_v41 = vpop.f32.mrf.mxu1 }
 0x19c   :  { %v224_v43 = vmax.f32 %v220_v40, 0.0 }
 0x19e   :  { %v225_v44 = vpack.c.bf16 %v224_v43, %v223_v42 }
 0x1a0   :  { %583 = vmatmul.mubr.bf16.vlgmr.msra.gmra.mxu0 %v225_v44 }
 0x260   :  { %v331_v49 = vpop.f32.mrf.mxu0 }
 0x261   :  { %v332_v51 = vadd.f32 %v481_v48, %v331_v49 }
 0x262   :  { %v584_v50 = vpop.f32.mrf.mxu0 }
 0x263   :  { %v338_v55 = vmax.f32 %v332_v51, 0.0 }
 0x264   :  { %v334_v52 = vpop.f32.mrf.mxu0 }
 0x265   :  { %v335_v53 = vadd.f32 %v481_v48, %v334_v52 }
 0x266   :  { %v585_v54 = vpop.f32.mrf.mxu0 }
 0x267   :  { %v339_v56 = vmax.f32 %v335_v53, 0.0 }
 0x269   :  { %v340_v57 = vpack.c.bf16 %v339_v56, %v338_v55 }
 0x26b   :  { %603 = vmatmul.mubr.bf16.vlgmr.msra.gmra.mxu1 %v340_v57 }
 0x32b   :  { %v446_v58 = vpop.f32.mrf.mxu1 }
 0x32c   :  { %v447_v62 = vadd.f32 %v490_v59, %v446_v58 }
 0x32d   :  { %v604_v60 = vpop.f32.mrf.mxu1 }
 0x32f   :  { %v449_v61 = vpop.f32.mrf.mxu1 }
 0x330   :  { %v450_v63 = vadd.f32 %v490_v59, %v449_v61 }
 0x331   :  { %v605_v0 = vpop.f32.mrf.mxu1 }
 0x332   :  { %v506_v1 = vpack.c.bf16 %v450_v63, %v447_v62 }
 0x334   :  { %507 = vst [vmem:[%s826_s9] sm:$0xff] %v506_v1  }

</bundles_post_ra>
